<compile_context>
chip_gen: v5e
topology: v5e:2x2
jax: 0.10.0
libtpu: 0.0.40
codegen_flags: <defaults>
</compile_context>

<pallas_src>
import jax
import jax.numpy as jnp
from jax.experimental import pallas as pl
from jax.experimental.pallas import tpu as pltpu

IN_FEATURES = 48 * 48   # 2304 (multiple of 128)
HIDDEN = 100
OUT = 10
HIDDEN_P = 128          # lane-padded hidden width
OUT_P = 128             # lane-padded output width
DEFAULT_TB = 1024       # max batch tile: (1024, 2304) f32 = 9.4 MB per buffer


def _round_up(n, m):
    return ((n + m - 1) // m) * m


def _pick_tb(B):
    """Batch tile: whole batch if tiny, else ~half the batch (>=2 grid tiles
    for megacore), 8-row aligned (f32 sublane), capped at DEFAULT_TB."""
    if B <= 8:
        return B
    return min(DEFAULT_TB, _round_up(pl.cdiv(B, 2), 8))


def _mlp_kernel(x_ref, w1_ref, b1_ref, w2_ref, b2_ref, o_ref):
    # x: (TB, 2304) f32, w1: (2304, 128) bf16, b1: (1, 128) f32,
    # w2: (128, 128) bf16, b2: (1, 128) f32, o: (TB, 128) f32
    x_bf = x_ref[...].astype(jnp.bfloat16)                      # cast in-register
    h = jnp.dot(x_bf, w1_ref[...], preferred_element_type=jnp.float32)
    h = jnp.maximum(h + b1_ref[...], 0.0)                       # bias + ReLU in f32
    y = jnp.dot(h.astype(jnp.bfloat16), w2_ref[...],
                preferred_element_type=jnp.float32)
    o_ref[...] = (y + b2_ref[...]).astype(o_ref.dtype)


def prepare_params(w1, b1, w2, b2):
    """One-time param prep: zero-pad to lane-aligned widths (exact) + bf16 cast.

    ReLU(0) = 0 and zero rows/cols of w2/b2 contribute nothing, so padding
    100->128 and 10->128 does not change the first 10 output columns.
    """
    w1_p = jnp.pad(w1.astype(jnp.bfloat16), ((0, 0), (0, HIDDEN_P - HIDDEN)))
    b1_p = jnp.pad(b1.astype(jnp.float32), (0, HIDDEN_P - HIDDEN)).reshape(1, HIDDEN_P)
    w2_p = jnp.pad(w2.astype(jnp.bfloat16),
                   ((0, HIDDEN_P - HIDDEN), (0, OUT_P - OUT)))
    b2_p = jnp.pad(b2.astype(jnp.float32), (0, OUT_P - OUT)).reshape(1, OUT_P)
    return w1_p, b1_p, w2_p, b2_p


def gtsrb_small_forward(x, w1_p, b1_p, w2_p, b2_p, *, tb=None):
    """x: (B, 1, 48, 48) or anything flattening to (B, 2304); params from
    prepare_params(). Returns (B, 10) f32 logits."""
    x2d = x.reshape(-1, IN_FEATURES).astype(jnp.float32)   # no-op cast if already f32
    B = x2d.shape[0]
    if tb is None:
        tb = _pick_tb(B)
    grid = (pl.cdiv(B, tb),)          # ragged last tile allowed; no batch padding

    cost = pl.CostEstimate(
        flops=2 * B * IN_FEATURES * HIDDEN_P + 2 * B * HIDDEN_P * OUT_P,
        transcendentals=0,
        bytes_accessed=(x2d.size * 4            # x read as f32 by the kernel
                        + w1_p.size * 2 + w2_p.size * 2
                        + b1_p.size * 4 + b2_p.size * 4
                        + B * OUT_P * 4),       # f32 output tile writes
    )

    out = pl.pallas_call(
        _mlp_kernel,
        out_shape=jax.ShapeDtypeStruct((B, OUT_P), jnp.float32),
        grid=grid,
        in_specs=[
            pl.BlockSpec((tb, IN_FEATURES), lambda i: (i, 0)),          # x: streamed
            pl.BlockSpec((IN_FEATURES, HIDDEN_P), lambda i: (0, 0)),    # w1: resident
            pl.BlockSpec((1, HIDDEN_P), lambda i: (0, 0)),              # b1: resident
            pl.BlockSpec((HIDDEN_P, OUT_P), lambda i: (0, 0)),          # w2: resident
            pl.BlockSpec((1, OUT_P), lambda i: (0, 0)),                 # b2: resident
        ],
        out_specs=pl.BlockSpec((tb, OUT_P), lambda i: (i, 0)),
        compiler_params=pltpu.CompilerParams(
            dimension_semantics=("parallel",),
            vmem_limit_bytes=40 * 1024 * 1024,   # headroom for v5e's 16 MiB default
        ),
        cost_estimate=cost,
    )(x2d, w1_p, b1_p, w2_p, b2_p)

    # Only the first 10 (lane-padded to 128) columns are real logits.
    return out[:, :OUT]


def init_params(key):
    """Deterministic synthetic params with the same shapes as the nn.Module."""
    k1, k2, k3, k4 = jax.random.split(key, 4)
    # fc1: Linear(2304, 100) -> weight stored transposed as (2304, 100) for x @ W
    bound1 = 1.0 / jnp.sqrt(IN_FEATURES)
    w1 = jax.random.uniform(k1, (IN_FEATURES, HIDDEN), jnp.float32, -bound1, bound1)
    b1 = jax.random.uniform(k2, (HIDDEN,), jnp.float32, -bound1, bound1)
    # fc2: Linear(100, 10) -> (100, 10)
    bound2 = 1.0 / jnp.sqrt(HIDDEN)
    w2 = jax.random.uniform(k3, (HIDDEN, OUT), jnp.float32, -bound2, bound2)
    b2 = jax.random.uniform(k4, (OUT,), jnp.float32, -bound2, bound2)
    return w1, b1, w2, b2


def _reference_f32(x, w1, b1, w2, b2):
    x2d = x.reshape(-1, IN_FEATURES).astype(jnp.float32)
    h = jnp.maximum(x2d @ w1 + b1, 0.0)
    return h @ w2 + b2


def _reference_bf16(x, w1, b1, w2, b2):
    # Same bf16-operand / f32-accumulate math as the kernel.
    x2d = x.reshape(-1, IN_FEATURES).astype(jnp.bfloat16)
    h = jnp.dot(x2d, w1.astype(jnp.bfloat16),
                preferred_element_type=jnp.float32) + b1
    h = jnp.maximum(h, 0.0).astype(jnp.bfloat16)
    return jnp.dot(h, w2.astype(jnp.bfloat16),
                   preferred_element_type=jnp.float32) + b2


if __name__ == "__main__":
    key = jax.random.PRNGKey(0)
    kx, kp = jax.random.split(key)
    # Small batch, NCHW like PyTorch. Feature dims (48x48) are fixed by fc1.
    x = jax.random.normal(kx, (2, 1, 48, 48), jnp.float32)
    w1, b1, w2, b2 = init_params(kp)
    params = prepare_params(w1, b1, w2, b2)   # padded/cast once, off the hot path

    fwd = jax.jit(gtsrb_small_forward)
    out = jax.block_until_ready(fwd(x, *params))
    assert out.shape == (2, OUT), out.shape

    # Tight check against a reference that uses the same bf16-operand math.
    ref_bf16 = _reference_bf16(x, w1, b1, w2, b2)
    assert jnp.allclose(out, ref_bf16, atol=2e-3, rtol=2e-3), "mismatch vs bf16 reference"

    # Looser sanity check against the pure-f32 PyTorch-equivalent reference.
    ref_f32 = _reference_f32(x, w1, b1, w2, b2)
    assert jnp.allclose(out, ref_f32, atol=5e-2, rtol=5e-2), "mismatch vs f32 reference"

    print("KERNEL_OK")
</pallas_src>

<mosaic_0001>
module attributes {stable_mosaic.version = 11 : i64} {
  func.func @_mlp_kernel(%arg0: i32, %arg1: memref<2x2304xf32, #tpu.memory_space<vmem>>, %arg2: memref<2304x128xbf16, #tpu.memory_space<vmem>>, %arg3: memref<1x128xf32, #tpu.memory_space<vmem>>, %arg4: memref<128x128xbf16, #tpu.memory_space<vmem>>, %arg5: memref<1x128xf32, #tpu.memory_space<vmem>>, %arg6: memref<2x128xf32, #tpu.memory_space<vmem>>) attributes {dimension_semantics = [#tpu.dimension_semantics<parallel>], iteration_bounds = array<i64: 1>, scalar_prefetch = 0 : i64, scratch_operands = 0 : i64, tpu.core_type = #tpu.core_type<tc>, window_params = [{transform_indices = @transform_0, window_bounds = array<i64: 2, 2304>}, {pipeline_mode = #tpu.pipeline_mode<synchronous>, transform_indices = @transform_1, window_bounds = array<i64: 2304, 128>}, {pipeline_mode = #tpu.pipeline_mode<synchronous>, transform_indices = @transform_2, window_bounds = array<i64: 1, 128>}, {pipeline_mode = #tpu.pipeline_mode<synchronous>, transform_indices = @transform_3, window_bounds = array<i64: 128, 128>}, {pipeline_mode = #tpu.pipeline_mode<synchronous>, transform_indices = @transform_4, window_bounds = array<i64: 1, 128>}, {transform_indices = @transform_5, window_bounds = array<i64: 2, 128>}]} {
    %c0 = arith.constant 0 : index
    %c0_0 = arith.constant 0 : index
    %0 = vector.load %arg1[%c0, %c0_0] : memref<2x2304xf32, #tpu.memory_space<vmem>>, vector<2x2304xf32>
    %1 = arith.truncf %0 : vector<2x2304xf32> to vector<2x2304xbf16>
    %c0_1 = arith.constant 0 : index
    %c0_2 = arith.constant 0 : index
    %2 = vector.load %arg2[%c0_1, %c0_2] : memref<2304x128xbf16, #tpu.memory_space<vmem>>, vector<2304x128xbf16>
    %cst = arith.constant dense<0.000000e+00> : vector<2x128xf32>
    %3 = tpu.matmul %1, %2, %cst {dimension_numbers = #tpu.dot_dimension_numbers<[1], [0], [0], [1], [0, 0, 1, 1], [], []>} : vector<2x2304xbf16>, vector<2304x128xbf16>, vector<2x128xf32> -> vector<2x128xf32>
    %c0_3 = arith.constant 0 : index
    %c0_4 = arith.constant 0 : index
    %4 = vector.load %arg3[%c0_3, %c0_4] : memref<1x128xf32, #tpu.memory_space<vmem>>, vector<1x128xf32>
    %5 = vector.broadcast %4 : vector<1x128xf32> to vector<2x128xf32>
    %6 = arith.addf %3, %5 : vector<2x128xf32>
    %cst_5 = arith.constant 0.000000e+00 : f32
    %7 = vector.broadcast %cst_5 : f32 to vector<2x128xf32>
    %8 = arith.maximumf %6, %7 : vector<2x128xf32>
    %9 = arith.truncf %8 : vector<2x128xf32> to vector<2x128xbf16>
    %c0_6 = arith.constant 0 : index
    %c0_7 = arith.constant 0 : index
    %10 = vector.load %arg4[%c0_6, %c0_7] : memref<128x128xbf16, #tpu.memory_space<vmem>>, vector<128x128xbf16>
    %cst_8 = arith.constant dense<0.000000e+00> : vector<2x128xf32>
    %11 = tpu.matmul %9, %10, %cst_8 {dimension_numbers = #tpu.dot_dimension_numbers<[1], [0], [0], [1], [0, 0, 1, 1], [], []>} : vector<2x128xbf16>, vector<128x128xbf16>, vector<2x128xf32> -> vector<2x128xf32>
    %c0_9 = arith.constant 0 : index
    %c0_10 = arith.constant 0 : index
    %12 = vector.load %arg5[%c0_9, %c0_10] : memref<1x128xf32, #tpu.memory_space<vmem>>, vector<1x128xf32>
    %13 = vector.broadcast %12 : vector<1x128xf32> to vector<2x128xf32>
    %14 = arith.addf %11, %13 : vector<2x128xf32>
    %c0_11 = arith.constant 0 : index
    %c0_12 = arith.constant 0 : index
    %15 = vector.load %arg6[%c0_11, %c0_12] : memref<2x128xf32, #tpu.memory_space<vmem>>, vector<2x128xf32>
    tpu.vector_store %arg6[%c0_11, %c0_12], %14 {strides = array<i32>} : memref<2x128xf32, #tpu.memory_space<vmem>>, vector<2x128xf32>,
    return
  }
  func.func @transform_0(%arg0: i32) -> (i32, i32) {
    %c0_i32 = arith.constant 0 : i32
    %c0_i32_0 = arith.constant 0 : i32
    return %arg0, %c0_i32 : i32, i32
  }
  func.func @transform_1(%arg0: i32) -> (i32, i32) {
    %c0_i32 = arith.constant 0 : i32
    %c0_i32_0 = arith.constant 0 : i32
    %c0_i32_1 = arith.constant 0 : i32
    return %c0_i32, %c0_i32_0 : i32, i32
  }
  func.func @transform_2(%arg0: i32) -> (i32, i32) {
    %c0_i32 = arith.constant 0 : i32
    %c0_i32_0 = arith.constant 0 : i32
    %c0_i32_1 = arith.constant 0 : i32
    return %c0_i32, %c0_i32_0 : i32, i32
  }
  func.func @transform_3(%arg0: i32) -> (i32, i32) {
    %c0_i32 = arith.constant 0 : i32
    %c0_i32_0 = arith.constant 0 : i32
    %c0_i32_1 = arith.constant 0 : i32
    return %c0_i32, %c0_i32_0 : i32, i32
  }
  func.func @transform_4(%arg0: i32) -> (i32, i32) {
    %c0_i32 = arith.constant 0 : i32
    %c0_i32_0 = arith.constant 0 : i32
    %c0_i32_1 = arith.constant 0 : i32
    return %c0_i32, %c0_i32_0 : i32, i32
  }
  func.func @transform_5(%arg0: i32) -> (i32, i32) {
    %c0_i32 = arith.constant 0 : i32
    %c0_i32_0 = arith.constant 0 : i32
    return %arg0, %c0_i32 : i32, i32
  }
}

</mosaic_0001>

<bundles_post_ra>
// kernel: gtsrb_small_forward.1
= control target key start
LH: loop header
LB: loop body
LE: loop exit
PB: predicated region body
PF: predicated region fallthrough
CT: control target
= control target key end

     0   :  { %10 = vsyncpa [#allocation3], 0  ;;  %s2533_s0 = inlined_call_operand.vmem [shape: f32[2,2304], index: 0, kind: input, shape index: {}]   ;;  %s2534_s1 = inlined_call_operand.hbm [shape: bf16[2304,128], index: 1, kind: input, shape index: {}]   ;;  %s2535_s2 = inlined_call_operand.vmem [shape: f32[1,128], index: 2, kind: input, shape index: {}]   ;;  %s2536_s3 = inlined_call_operand.vmem [shape: bf16[128,128], index: 3, kind: input, shape index: {}]   ;;  %s2537_s4 = inlined_call_operand.vmem [shape: f32[1,128], index: 4, kind: input, shape index: {}]   ;;  %s2538_s5 = inlined_call_operand.hbm [shape: f32[2,128], index: 5, kind: output, shape index: {}]  }
   0x1   :  { %11 = vsyncpa [#allocation4], 0  ;;  %s18_s20 = sshll.u32 %s2534_s1, 4  ;;  %s2416_s21 = smov [#allocation2]   ;;  %s19_s20 = int_to_ptr.hbm [resolvable:$true] %s18_s20 }
   0x2   :  { %s20_s22 = sshll.u32 %s2416_s21, 4  ;;  %s2417_s23 = smov 64   ;;  %s21_s22 = int_to_ptr.vmem [resolvable:$true] %s20_s22 }
   0x3   :  { %s2418_s24 = smov 4  }
   0x4   :  { %26 = dma.hbm_to_vmem [thread:$0]  %s19_s20, 18432, %s21_s22, [#allocation3], %s2417_s23, %s2417_s23, %s2418_s24  }
   0x5   :  { %2412 = dma.done.wait [#allocation3], 18432  }
   0x6   :  { %2413 = vsyncadd [#allocation3], 4294948864  ;;  %v2213_v0 = vld [vmem:[#allocation2 + $0x38] sm:$0xff]  ;;  %v2212_v4 = vld [vmem:[#allocation2 + $0x30] sm:$0xff]  ;;  %s2419_s25 = smov [#allocation5]   ;;  %s1588_s29 = sshll.u32 %s2538_s5, 4  ;;  %s1589_s29 = int_to_ptr.hbm [resolvable:$true] %s1588_s29 }
   0x7   :  { %v2221_v1 = vld [vmem:[#allocation2 + $0x78] sm:$0xff]  ;;  %1263 = vmatpush.bf16.msra.mxu0 %v2213_v0  ;;  %v2220_v5 = vld [vmem:[#allocation2 + $0x70] sm:$0xff]  ;;  %v2211_v8 = vld [vmem:[#allocation2 + $0x28] sm:$0xff]  ;;  %s1586_s26 = sshll.u32 %s2419_s25, 4  ;;  %s1587_s26 = int_to_ptr.vmem [resolvable:$true] %s1586_s26 }
   0x8   :  { %v2229_v2 = vld [vmem:[#allocation2 + $0xb8] sm:$0xff]  ;;  %1276 = vmatpush.bf16.msra.mxu1 %v2221_v1  ;;  %v2228_v6 = vld [vmem:[#allocation2 + $0xb0] sm:$0xff]  ;;  %v2219_v9 = vld [vmem:[#allocation2 + $0x68] sm:$0xff] }
   0x9   :  { %v2237_v3 = vld [vmem:[#allocation2 + $0xf8] sm:$0xff]  ;;  %1289 = vmatpush.bf16.msra.mxu2 %v2229_v2  ;;  %v2236_v7 = vld [vmem:[#allocation2 + $0xf0] sm:$0xff]  ;;  %v2227_v10 = vld [vmem:[#allocation2 + $0xa8] sm:$0xff] }
   0xa   :  { %1302 = vmatpush.bf16.msra.mxu3 %v2237_v3  ;;  %v2235_v11 = vld [vmem:[#allocation2 + $0xe8] sm:$0xff]  ;;  %v2210_v12 = vld [vmem:[#allocation2 + $0x20] sm:$0xff]  ;;  %v2209_v16 = vld [vmem:[#allocation2 + $0x18] sm:$0xff] }
   0xb   :  { %1264 = vmatpush.bf16.msra.mxu0 %v2212_v4  ;;  %v2218_v13 = vld [vmem:[#allocation2 + $0x60] sm:$0xff]  ;;  %v2217_v17 = vld [vmem:[#allocation2 + $0x58] sm:$0xff]  ;;  %v2208_v21 = vld [vmem:[#allocation2 + $0x10] sm:$0xff] }
   0xc   :  { %1277 = vmatpush.bf16.msra.mxu1 %v2220_v5  ;;  %v2226_v14 = vld [vmem:[#allocation2 + $0xa0] sm:$0xff]  ;;  %v2225_v18 = vld [vmem:[#allocation2 + $0x98] sm:$0xff]  ;;  %v2216_v22 = vld [vmem:[#allocation2 + $0x50] sm:$0xff] }
   0xd   :  { %1290 = vmatpush.bf16.msra.mxu2 %v2228_v6  ;;  %v2234_v15 = vld [vmem:[#allocation2 + $0xe0] sm:$0xff]  ;;  %v2233_v19 = vld [vmem:[#allocation2 + $0xd8] sm:$0xff]  ;;  %v2224_v23 = vld [vmem:[#allocation2 + $0x90] sm:$0xff] }
   0xe   :  { %1303 = vmatpush.bf16.msra.mxu3 %v2236_v7  ;;  %v37_v20 = vld [vmem:[%s2533_s0] sm:$0xff]  ;;  %v2232_v24 = vld [vmem:[#allocation2 + $0xd0] sm:$0xff]  ;;  %v2207_v25 = vld [vmem:[#allocation2 + $0x8] sm:$0xff] }
   0xf   :  { %1265 = vmatpush.bf16.msra.mxu0 %v2211_v8  ;;  %47 = vst [vmem:[#allocation1] ss:$4 sm:$0xff] %v37_v20  ;;  %v2215_v26 = vld [vmem:[#allocation2 + $0x48] sm:$0xff]  ;;  %v2206_v29 = vld [vmem:[#allocation2] sm:$0xff]  ;;  %v2245_v37 = vld [vmem:[#allocation2 + $0x138] sm:$0xff] }
  0x10   :  { %1278 = vmatpush.bf16.msra.mxu1 %v2219_v9  ;;  %v2223_v27 = vld [vmem:[#allocation2 + $0x88] sm:$0xff]  ;;  %v2214_v30 = vld [vmem:[#allocation2 + $0x40] sm:$0xff]  ;;  %v2253_v38 = vld [vmem:[#allocation2 + $0x178] sm:$0xff] }
  0x11   :  { %1291 = vmatpush.bf16.msra.mxu2 %v2227_v10  ;;  %v2231_v28 = vld [vmem:[#allocation2 + $0xc8] sm:$0xff]  ;;  %v2222_v36 = vld [vmem:[#allocation2 + $0x80] sm:$0xff]  ;;  %v2261_v39 = vld [vmem:[#allocation2 + $0x1b8] sm:$0xff] }
  0x12   :  { %1304 = vmatpush.bf16.msra.mxu3 %v2235_v11  ;;  %v39_v31 = vld [vmem:[%s2533_s0 + $0x10] sm:$0xff]  ;;  %v2230_v40 = vld [vmem:[#allocation2 + $0xc0] sm:$0xff]  ;;  %v2269_v43 = vld [vmem:[#allocation2 + $0x1f8] sm:$0xff] }
  0x13   :  { %1266 = vmatpush.bf16.msra.mxu0 %v2210_v12  ;;  %v38_v42 = vld [vmem:[%s2533_s0 + $0x8] sm:$0xff]  ;;  %v2244_v45 = vld [vmem:[#allocation2 + $0x130] sm:$0xff]  ;;  %v2243_v51 = vld [vmem:[#allocation2 + $0x128] sm:$0xff] }
  0x14   :  { %1279 = vmatpush.bf16.msra.mxu1 %v2218_v13  ;;  %49 = vst [vmem:[#allocation1 + $0x20] ss:$4 sm:$0xff] %v38_v42  ;;  %v2252_v47 = vld [vmem:[#allocation2 + $0x170] sm:$0xff]  ;;  %v2251_v52 = vld [vmem:[#allocation2 + $0x168] sm:$0xff]  ;;  %v2242_v56 = vld [vmem:[#allocation2 + $0x120] sm:$0xff] }
  0x15   :  { %1292 = vmatpush.bf16.msra.mxu2 %v2226_v14  ;;  %v2260_v48 = vld [vmem:[#allocation2 + $0x1b0] sm:$0xff]  ;;  %v2259_v53 = vld [vmem:[#allocation2 + $0x1a8] sm:$0xff]  ;;  %v2250_v61 = vld [vmem:[#allocation2 + $0x160] sm:$0xff] }
  0x16   :  { %1305 = vmatpush.bf16.msra.mxu3 %v2234_v15  ;;  %v52_v32 = vld.sshfl [vmem:[#allocation1 + $0x10] sm:$0xff pattern:$0x73625140]  ;;  %v50_v33 = vld.sshfl [vmem:[#allocation1] sm:$0xff pattern:$0x73625140] }
  0x17   :  { %1267 = vmatpush.bf16.msra.mxu0 %v2209_v16  ;;  %v53_v34 = vld.sshfl [vmem:[#allocation1 + $0x18] sm:$0xff pattern:$0x73625140]  ;;  %v51_v35 = vld.sshfl [vmem:[#allocation1 + $0x8] sm:$0xff pattern:$0x73625140]  ;;  %v89_v41 = vpack.c.bf16 %v50_v33, %v50_v33  ;;  %v91_v44 = vpack.c.bf16 %v52_v32, %v52_v32 }
  0x18   :  { %1280 = vmatpush.bf16.msra.mxu1 %v2217_v17  ;;  %58 = vst [vmem:[#allocation1] ss:$4 sm:$0xff] %v39_v31  ;;  %v90_v46 = vpack.c.bf16 %v51_v35, %v51_v35  ;;  %v92_v49 = vpack.c.bf16 %v53_v34, %v53_v34  ;;  %v2268_v50 = vld [vmem:[#allocation2 + $0x1f0] sm:$0xff]  ;;  %v2267_v54 = vld [vmem:[#allocation2 + $0x1e8] sm:$0xff]  ;;  %v2258_v62 = vld [vmem:[#allocation2 + $0x1a0] sm:$0xff] }
  0x19   :  { %1293 = vmatpush.bf16.msra.mxu2 %v2225_v18  ;;  %v40_v58 = vld [vmem:[%s2533_s0 + $0x18] sm:$0xff]  ;;  %v2266_v63 = vld [vmem:[#allocation2 + $0x1e0] sm:$0xff]  ;;  %v2241_v0 = vld [vmem:[#allocation2 + $0x118] sm:$0xff] }
  0x1a   :  { %1306 = vmatpush.bf16.msra.mxu3 %v2233_v19  ;;  %v2249_v1 = vld [vmem:[#allocation2 + $0x158] sm:$0xff]  ;;  %v2240_v4 = vld [vmem:[#allocation2 + $0x110] sm:$0xff]  ;;  %v2239_v8 = vld [vmem:[#allocation2 + $0x108] sm:$0xff] }
  0x1b   :  { %1268 = vmatpush.bf16.msra.mxu0 %v2208_v21  ;;  %v2462_v55 = vld.sshfl [vmem:[#allocation1 + $0x30] sm:$0xff pattern:$0x73625140]  ;;  %v2464_v57 = vld.sshfl [vmem:[#allocation1 + $0x20] sm:$0xff pattern:$0x73625140] }
  0x1c   :  { %1281 = vmatpush.bf16.msra.mxu1 %v2216_v22  ;;  %v2469_v59 = vld.sshfl [vmem:[#allocation1 + $0x38] sm:$0xff pattern:$0x73625140]  ;;  %v2471_v60 = vld.sshfl [vmem:[#allocation1 + $0x28] sm:$0xff pattern:$0x73625140]  ;;  %v95_v20 = vpack.c.bf16 %v2462_v55, %v2462_v55 }
  0x1d   :  { %1294 = vmatpush.bf16.msra.mxu2 %v2224_v23  ;;  %59 = vst [vmem:[#allocation1 + $0x20] ss:$4 sm:$0xff] %v40_v58  ;;  %v2257_v2 = vld [vmem:[#allocation2 + $0x198] sm:$0xff]  ;;  %v2248_v5 = vld [vmem:[#allocation2 + $0x150] sm:$0xff]  ;;  %v2247_v9 = vld [vmem:[#allocation2 + $0x148] sm:$0xff]  ;;  %v93_v23 = vpack.c.bf16 %v2464_v57, %v2464_v57 }
  0x1e   :  { %1307 = vmatpush.bf16.msra.mxu3 %v2232_v24  ;;  %v2265_v3 = vld [vmem:[#allocation2 + $0x1d8] sm:$0xff]  ;;  %v2256_v6 = vld [vmem:[#allocation2 + $0x190] sm:$0xff]  ;;  %v2255_v10 = vld [vmem:[#allocation2 + $0x188] sm:$0xff]  ;;  %v94_v24 = vpack.c.bf16 %v2471_v60, %v2471_v60 }
  0x1f   :  { %1269 = vmatpush.bf16.msra.mxu0 %v2207_v25  ;;  %v2264_v7 = vld [vmem:[#allocation2 + $0x1d0] sm:$0xff]  ;;  %v2263_v11 = vld [vmem:[#allocation2 + $0x1c8] sm:$0xff]  ;;  %v2238_v12 = vld [vmem:[#allocation2 + $0x100] sm:$0xff] }
  0x20   :  { %1282 = vmatpush.bf16.msra.mxu1 %v2215_v26  ;;  %v2246_v13 = vld [vmem:[#allocation2 + $0x140] sm:$0xff]  ;;  %v2277_v15 = vld [vmem:[#allocation2 + $0x238] sm:$0xff]  ;;  %v2276_v21 = vld [vmem:[#allocation2 + $0x230] sm:$0xff] }
  0x21   :  { %1295 = vmatpush.bf16.msra.mxu2 %v2223_v27  ;;  %v2254_v14 = vld [vmem:[#allocation2 + $0x180] sm:$0xff]  ;;  %v2285_v16 = vld [vmem:[#allocation2 + $0x278] sm:$0xff]  ;;  %v2284_v22 = vld [vmem:[#allocation2 + $0x270] sm:$0xff] }
  0x22   :  { %1308 = vmatpush.bf16.msra.mxu3 %v2231_v28  ;;  %v2293_v17 = vld [vmem:[#allocation2 + $0x2b8] sm:$0xff]  ;;  %v2262_v18 = vld [vmem:[#allocation2 + $0x1c0] sm:$0xff]  ;;  %v2481_v26 = vld.sshfl [vmem:[#allocation1 + $0x10] sm:$0xff pattern:$0x73625140] }
  0x23   :  { %1270 = vmatpush.bf16.msra.mxu0 %v2206_v29  ;;  %v2301_v19 = vld [vmem:[#allocation2 + $0x2f8] sm:$0xff]  ;;  %v2483_v27 = vld.sshfl [vmem:[#allocation1 + $0x8] sm:$0xff pattern:$0x73625140]  ;;  %v2292_v28 = vld [vmem:[#allocation2 + $0x2b0] sm:$0xff]  ;;  %v96_v29 = vpack.c.bf16 %v2469_v59, %v2469_v59 }
  0x24   :  { %1283 = vmatpush.bf16.msra.mxu1 %v2214_v30  ;;  %v2479_v25 = vld.sshfl [vmem:[#allocation1] sm:$0xff pattern:$0x73625140]  ;;  %v2490_v31 = vld.sshfl [vmem:[#allocation1 + $0x18] sm:$0xff pattern:$0x73625140] }
  0x25   :  { %1296 = vmatpush.bf16.msra.mxu2 %v2222_v36  ;;  %v41_v30 = vld [vmem:[%s2533_s0 + $0x20] sm:$0xf]  ;;  %v2300_v32 = vld [vmem:[#allocation2 + $0x2f0] sm:$0xff]  ;;  %v2275_v33 = vld [vmem:[#allocation2 + $0x228] sm:$0xff]  ;;  %v97_v60 = vpack.c.bf16 %v2479_v25, %v2479_v25 }
  0x26   :  { %1309 = vmatpush.bf16.msra.mxu3 %v2230_v40  ;;  %1271 = vmatmul.bf16.vlgmr.msra.gmra.mxu0 %v89_v41  ;;  %68 = vst [vmem:[#allocation1] ss:$4 sm:$0xff] %v41_v30  ;;  %v2283_v34 = vld [vmem:[#allocation2 + $0x268] sm:$0xff]  ;;  %v2298_v40 = vld [vmem:[#allocation2 + $0x2e0] sm:$0xff]  ;;  %v2273_v41 = vld [vmem:[#allocation2 + $0x218] sm:$0xff] }
  0x27   :  { %1315 = vmatpush.bf16.msrb.mxu0 %v2245_v37  ;;  %1284 = vmatmul.bf16.vlgmr.msra.gmra.mxu1 %v90_v46  ;;  %v2291_v35 = vld [vmem:[#allocation2 + $0x2a8] sm:$0xff]  ;;  %v2274_v37 = vld [vmem:[#allocation2 + $0x220] sm:$0xff]  ;;  %v2281_v42 = vld [vmem:[#allocation2 + $0x258] sm:$0xff] }
  0x28   :  { %1328 = vmatpush.bf16.msrb.mxu1 %v2253_v38  ;;  %1297 = vmatmul.bf16.vlgmr.msra.gmra.mxu2 %v91_v44  ;;  %v2299_v36 = vld [vmem:[#allocation2 + $0x2e8] sm:$0xff]  ;;  %v2282_v38 = vld [vmem:[#allocation2 + $0x260] sm:$0xff]  ;;  %v2297_v44 = vld [vmem:[#allocation2 + $0x2d8] sm:$0xff] }
  0x29   :  { %1341 = vmatpush.bf16.msrb.mxu2 %v2261_v39  ;;  %1310 = vmatmul.bf16.vlgmr.msra.gmra.mxu3 %v92_v49  ;;  %v2290_v39 = vld [vmem:[#allocation2 + $0x2a0] sm:$0xff]  ;;  %v2280_v46 = vld [vmem:[#allocation2 + $0x250] sm:$0xff]  ;;  %v2271_v49 = vld [vmem:[#allocation2 + $0x208] sm:$0xff] }
  0x2a   :  { %1354 = vmatpush.bf16.msrb.mxu3 %v2269_v43  ;;  %v2289_v43 = vld [vmem:[#allocation2 + $0x298] sm:$0xff]  ;;  %v2286_v55 = vld [vmem:[#allocation2 + $0x280] sm:$0xff] }
  0x2b   :  { %1316 = vmatpush.bf16.msrb.mxu0 %v2244_v45  ;;  %v2272_v45 = vld [vmem:[#allocation2 + $0x210] sm:$0xff]  ;;  %v2317_v57 = vld [vmem:[#allocation2 + $0x378] sm:$0xff]  ;;  %v2294_v59 = vld [vmem:[#allocation2 + $0x2c0] sm:$0xff] }
  0x2c   :  { %1329 = vmatpush.bf16.msrb.mxu1 %v2252_v47  ;;  %v2288_v47 = vld [vmem:[#allocation2 + $0x290] sm:$0xff]  ;;  %v2325_v58 = vld [vmem:[#allocation2 + $0x3b8] sm:$0xff]  ;;  %v2302_v25 = vld [vmem:[#allocation2 + $0x300] sm:$0xff] }
  0x2d   :  { %1342 = vmatpush.bf16.msrb.mxu2 %v2260_v48  ;;  %v2296_v48 = vld [vmem:[#allocation2 + $0x2d0] sm:$0xff]  ;;  %v2318_v30 = vld [vmem:[#allocation2 + $0x380] sm:$0xff] }
  0x2e   :  { %1355 = vmatpush.bf16.msrb.mxu3 %v2268_v50  ;;  %v2279_v50 = vld [vmem:[#allocation2 + $0x248] sm:$0xff] }
  0x2f   :  { %1317 = vmatpush.bf16.msrb.mxu0 %v2243_v51  ;;  %v2287_v51 = vld [vmem:[#allocation2 + $0x288] sm:$0xff] }
  0x30   :  { %1330 = vmatpush.bf16.msrb.mxu1 %v2251_v52  ;;  %v2295_v52 = vld [vmem:[#allocation2 + $0x2c8] sm:$0xff] }
  0x31   :  { %1343 = vmatpush.bf16.msrb.mxu2 %v2259_v53  ;;  %v2270_v53 = vld [vmem:[#allocation2 + $0x200] sm:$0xff] }
  0x32   :  { %1356 = vmatpush.bf16.msrb.mxu3 %v2267_v54  ;;  %v2278_v54 = vld [vmem:[#allocation2 + $0x240] sm:$0xff] }
  0x33   :  { %1318 = vmatpush.bf16.msrb.mxu0 %v2242_v56  ;;  %v2309_v56 = vld [vmem:[#allocation2 + $0x338] sm:$0xff] }
  0x34   :  { %1331 = vmatpush.bf16.msrb.mxu1 %v2250_v61  ;;  %v99_v61 = vpack.c.bf16 %v2481_v26, %v2481_v26  ;;  %v64_v26 = vld.sshfl [vmem:[#allocation1 + $0x20] sm:$0xff pattern:$0x73625140] }
  0x35   :  { %1344 = vmatpush.bf16.msrb.mxu2 %v2258_v62  ;;  %v2333_v62 = vld [vmem:[#allocation2 + $0x3f8] sm:$0xff] }
  0x36   :  { %1357 = vmatpush.bf16.msrb.mxu3 %v2266_v63  ;;  %v98_v63 = vpack.c.bf16 %v2483_v27, %v2483_v27  ;;  %v2310_v27 = vld [vmem:[#allocation2 + $0x340] sm:$0xff] }
  0x37   :  { %1319 = vmatpush.bf16.msrb.mxu0 %v2241_v0  ;;  %v2308_v0 = vld [vmem:[#allocation2 + $0x330] sm:$0xff] }
  0x38   :  { %1332 = vmatpush.bf16.msrb.mxu1 %v2249_v1  ;;  %v100_v1 = vpack.c.bf16 %v2490_v31, %v2490_v31  ;;  %v2349_v31 = vld [vmem:[#allocation2 + $0x478] sm:$0xff] }
  0x39   :  { %1345 = vmatpush.bf16.msrb.mxu2 %v2257_v2  ;;  %v2316_v2 = vld [vmem:[#allocation2 + $0x370] sm:$0xff] }
  0x3a   :  { %1358 = vmatpush.bf16.msrb.mxu3 %v2265_v3  ;;  %v2324_v3 = vld [vmem:[#allocation2 + $0x3b0] sm:$0xff] }
  0x3b   :  { %1320 = vmatpush.bf16.msrb.mxu0 %v2240_v4  ;;  %v2332_v4 = vld [vmem:[#allocation2 + $0x3f0] sm:$0xff] }
  0x3c   :  { %1333 = vmatpush.bf16.msrb.mxu1 %v2248_v5  ;;  %v2307_v5 = vld [vmem:[#allocation2 + $0x328] sm:$0xff] }
  0x3d   :  { %1346 = vmatpush.bf16.msrb.mxu2 %v2256_v6  ;;  %v2315_v6 = vld [vmem:[#allocation2 + $0x368] sm:$0xff] }
  0x3e   :  { %1359 = vmatpush.bf16.msrb.mxu3 %v2264_v7  ;;  %v2323_v7 = vld [vmem:[#allocation2 + $0x3a8] sm:$0xff] }
  0x3f   :  { %1321 = vmatpush.bf16.msrb.mxu0 %v2239_v8  ;;  %v2331_v8 = vld [vmem:[#allocation2 + $0x3e8] sm:$0xff] }
  0x40   :  { %1334 = vmatpush.bf16.msrb.mxu1 %v2247_v9  ;;  %v2306_v9 = vld [vmem:[#allocation2 + $0x320] sm:$0xff] }
  0x41   :  { %1347 = vmatpush.bf16.msrb.mxu2 %v2255_v10  ;;  %v2314_v10 = vld [vmem:[#allocation2 + $0x360] sm:$0xff] }
  0x42   :  { %1360 = vmatpush.bf16.msrb.mxu3 %v2263_v11  ;;  %v2322_v11 = vld [vmem:[#allocation2 + $0x3a0] sm:$0xff] }
  0x43   :  { %1322 = vmatpush.bf16.msrb.mxu0 %v2238_v12  ;;  %v2330_v12 = vld [vmem:[#allocation2 + $0x3e0] sm:$0xff] }
  0x44   :  { %1335 = vmatpush.bf16.msrb.mxu1 %v2246_v13  ;;  %v2305_v13 = vld [vmem:[#allocation2 + $0x318] sm:$0xff] }
  0x45   :  { %1348 = vmatpush.bf16.msrb.mxu2 %v2254_v14  ;;  %v2313_v14 = vld [vmem:[#allocation2 + $0x358] sm:$0xff] }
  0x46   :  { %1361 = vmatpush.bf16.msrb.mxu3 %v2262_v18  ;;  %1323 = vmatmul.bf16.vlgmr.msrb.gmra.mxu0 %v93_v23  ;;  %v2312_v18 = vld [vmem:[#allocation2 + $0x350] sm:$0xff]  ;;  %v2319_v23 = vld [vmem:[#allocation2 + $0x388] sm:$0xff] }
  0x47   :  { %1367 = vmatpush.bf16.msra.mxu0 %v2277_v15  ;;  %1336 = vmatmul.bf16.vlgmr.msrb.gmra.mxu1 %v94_v24  ;;  %v2321_v15 = vld [vmem:[#allocation2 + $0x398] sm:$0xff]  ;;  %v2327_v24 = vld [vmem:[#allocation2 + $0x3c8] sm:$0xff] }
  0x48   :  { %1380 = vmatpush.bf16.msra.mxu1 %v2285_v16  ;;  %1349 = vmatmul.bf16.vlgmr.msrb.gmra.mxu2 %v95_v20  ;;  %v2329_v16 = vld [vmem:[#allocation2 + $0x3d8] sm:$0xff]  ;;  %v2328_v20 = vld [vmem:[#allocation2 + $0x3d0] sm:$0xff] }
  0x49   :  { %1393 = vmatpush.bf16.msra.mxu2 %v2293_v17  ;;  %1362 = vmatmul.bf16.vlgmr.msrb.gmra.mxu3 %v96_v29  ;;  %v2304_v17 = vld [vmem:[#allocation2 + $0x310] sm:$0xff]  ;;  %v65_v29 = vld.sshfl [vmem:[#allocation1 + $0x28] sm:$0xff pattern:$0x73625140] }
  0x4a   :  { %1406 = vmatpush.bf16.msra.mxu3 %v2301_v19  ;;  %v2320_v19 = vld [vmem:[#allocation2 + $0x390] sm:$0xff] }
  0x4b   :  { %1368 = vmatpush.bf16.msra.mxu0 %v2276_v21  ;;  %v2303_v21 = vld [vmem:[#allocation2 + $0x308] sm:$0xff] }
  0x4c   :  { %1381 = vmatpush.bf16.msra.mxu1 %v2284_v22  ;;  %v2311_v22 = vld [vmem:[#allocation2 + $0x348] sm:$0xff] }
  0x4d   :  { %1394 = vmatpush.bf16.msra.mxu2 %v2292_v28  ;;  %v2341_v28 = vld [vmem:[#allocation2 + $0x438] sm:$0xff] }
  0x4e   :  { %1407 = vmatpush.bf16.msra.mxu3 %v2300_v32  ;;  %v66_v32 = vld.sshfl [vmem:[#allocation1 + $0x30] sm:$0xff pattern:$0x73625140] }
  0x4f   :  { %1369 = vmatpush.bf16.msra.mxu0 %v2275_v33  ;;  %v2326_v33 = vld [vmem:[#allocation2 + $0x3c0] sm:$0xff] }
  0x50   :  { %1382 = vmatpush.bf16.msra.mxu1 %v2283_v34  ;;  %v101_v34 = vpack.c.bf16 %v64_v26, %v64_v26  ;;  %v2353_v26 = vld [vmem:[%s2536_s3 + $0x18] sm:$0xff] }
  0x51   :  { %1395 = vmatpush.bf16.msra.mxu2 %v2291_v35  ;;  %v67_v35 = vld.sshfl [vmem:[#allocation1 + $0x38] sm:$0xff pattern:$0x73625140] }
  0x52   :  { %1408 = vmatpush.bf16.msra.mxu3 %v2299_v36  ;;  %v102_v36 = vpack.c.bf16 %v65_v29, %v65_v29 }
  0x53   :  { %1370 = vmatpush.bf16.msra.mxu0 %v2274_v37  ;;  %v103_v37 = vpack.c.bf16 %v66_v32, %v66_v32 }
  0x54   :  { %1383 = vmatpush.bf16.msra.mxu1 %v2282_v38  ;;  %v2340_v38 = vld [vmem:[#allocation2 + $0x430] sm:$0xff] }
  0x55   :  { %1396 = vmatpush.bf16.msra.mxu2 %v2290_v39  ;;  %v104_v39 = vpack.c.bf16 %v67_v35, %v67_v35 }
  0x56   :  { %1409 = vmatpush.bf16.msra.mxu3 %v2298_v40  ;;  %v2348_v40 = vld [vmem:[#allocation2 + $0x470] sm:$0xff] }
  0x57   :  { %1371 = vmatpush.bf16.msra.mxu0 %v2273_v41  ;;  %v2339_v41 = vld [vmem:[#allocation2 + $0x428] sm:$0xff] }
  0x58   :  { %1384 = vmatpush.bf16.msra.mxu1 %v2281_v42  ;;  %v2347_v42 = vld [vmem:[#allocation2 + $0x468] sm:$0xff] }
  0x59   :  { %1397 = vmatpush.bf16.msra.mxu2 %v2289_v43  ;;  %v2338_v43 = vld [vmem:[#allocation2 + $0x420] sm:$0xff] }
  0x5a   :  { %1410 = vmatpush.bf16.msra.mxu3 %v2297_v44  ;;  %v2346_v44 = vld [vmem:[#allocation2 + $0x460] sm:$0xff] }
  0x5b   :  { %1372 = vmatpush.bf16.msra.mxu0 %v2272_v45  ;;  %v2337_v45 = vld [vmem:[#allocation2 + $0x418] sm:$0xff] }
  0x5c   :  { %1385 = vmatpush.bf16.msra.mxu1 %v2280_v46  ;;  %v2345_v46 = vld [vmem:[#allocation2 + $0x458] sm:$0xff] }
  0x5d   :  { %1398 = vmatpush.bf16.msra.mxu2 %v2288_v47  ;;  %v2336_v47 = vld [vmem:[#allocation2 + $0x410] sm:$0xff] }
  0x5e   :  { %1411 = vmatpush.bf16.msra.mxu3 %v2296_v48  ;;  %v2344_v48 = vld [vmem:[#allocation2 + $0x450] sm:$0xff] }
  0x5f   :  { %1373 = vmatpush.bf16.msra.mxu0 %v2271_v49  ;;  %v2335_v49 = vld [vmem:[#allocation2 + $0x408] sm:$0xff] }
  0x60   :  { %1386 = vmatpush.bf16.msra.mxu1 %v2279_v50  ;;  %v2343_v50 = vld [vmem:[#allocation2 + $0x448] sm:$0xff] }
  0x61   :  { %1399 = vmatpush.bf16.msra.mxu2 %v2287_v51  ;;  %v2334_v51 = vld [vmem:[#allocation2 + $0x400] sm:$0xff] }
  0x62   :  { %1412 = vmatpush.bf16.msra.mxu3 %v2295_v52  ;;  %v69_v52 = vld.sshfl [vmem:[#allocation1] sm:$0xff pattern:$0x73625140] }
  0x63   :  { %1374 = vmatpush.bf16.msra.mxu0 %v2270_v53  ;;  %v2342_v53 = vld [vmem:[#allocation2 + $0x440] sm:$0xff] }
  0x64   :  { %1387 = vmatpush.bf16.msra.mxu1 %v2278_v54  ;;  %v70_v54 = vld.sshfl [vmem:[#allocation1 + $0x8] sm:$0xff pattern:$0x73625140] }
  0x65   :  { %1400 = vmatpush.bf16.msra.mxu2 %v2286_v55  ;;  %v105_v55 = vpack.c.bf16 %v69_v52, %v69_v52 }
  0x66   :  { %1413 = vmatpush.bf16.msra.mxu3 %v2294_v59  ;;  %1375 = vmatmul.bf16.vlgmr.msra.gmra.mxu0 %v97_v60 }
  0x67   :  { %1419 = vmatpush.bf16.msrb.mxu0 %v2309_v56  ;;  %1388 = vmatmul.bf16.vlgmr.msra.gmra.mxu1 %v98_v63  ;;  %v106_v56 = vpack.c.bf16 %v70_v54, %v70_v54 }
  0x68   :  { %1432 = vmatpush.bf16.msrb.mxu1 %v2317_v57  ;;  %1401 = vmatmul.bf16.vlgmr.msra.gmra.mxu2 %v99_v61  ;;  %v2362_v57 = vld [vmem:[%s2535_s2] ss:$0 sm:$0xff] }
  0x69   :  { %1445 = vmatpush.bf16.msrb.mxu2 %v2325_v58  ;;  %1414 = vmatmul.bf16.vlgmr.msra.gmra.mxu3 %v100_v1 }
  0x6a   :  { %1458 = vmatpush.bf16.msrb.mxu3 %v2333_v62 }
  0x6b   :  { %1420 = vmatpush.bf16.msrb.mxu0 %v2308_v0 }
  0x6c   :  { %1433 = vmatpush.bf16.msrb.mxu1 %v2316_v2 }
  0x6d   :  { %1446 = vmatpush.bf16.msrb.mxu2 %v2324_v3 }
  0x6e   :  { %1459 = vmatpush.bf16.msrb.mxu3 %v2332_v4 }
  0x6f   :  { %1421 = vmatpush.bf16.msrb.mxu0 %v2307_v5 }
  0x70   :  { %1434 = vmatpush.bf16.msrb.mxu1 %v2315_v6 }
  0x71   :  { %1447 = vmatpush.bf16.msrb.mxu2 %v2323_v7 }
  0x72   :  { %1460 = vmatpush.bf16.msrb.mxu3 %v2331_v8 }
  0x73   :  { %1422 = vmatpush.bf16.msrb.mxu0 %v2306_v9 }
  0x74   :  { %1435 = vmatpush.bf16.msrb.mxu1 %v2314_v10 }
  0x75   :  { %1448 = vmatpush.bf16.msrb.mxu2 %v2322_v11 }
  0x76   :  { %1461 = vmatpush.bf16.msrb.mxu3 %v2330_v12 }
  0x77   :  { %1423 = vmatpush.bf16.msrb.mxu0 %v2305_v13 }
  0x78   :  { %1436 = vmatpush.bf16.msrb.mxu1 %v2313_v14 }
  0x79   :  { %1449 = vmatpush.bf16.msrb.mxu2 %v2321_v15 }
  0x7a   :  { %1462 = vmatpush.bf16.msrb.mxu3 %v2329_v16  ;;  %v2357_v16 = vld [vmem:[%s2536_s3 + $0x38] sm:$0xff] }
  0x7b   :  { %1424 = vmatpush.bf16.msrb.mxu0 %v2304_v17 }
  0x7c   :  { %1437 = vmatpush.bf16.msrb.mxu1 %v2312_v18 }
  0x7d   :  { %1450 = vmatpush.bf16.msrb.mxu2 %v2320_v19  ;;  %v2356_v19 = vld [vmem:[%s2536_s3 + $0x30] sm:$0xff] }
  0x7e   :  { %1463 = vmatpush.bf16.msrb.mxu3 %v2328_v20 }
  0x7f   :  { %1425 = vmatpush.bf16.msrb.mxu0 %v2303_v21 }
  0x80   :  { %1438 = vmatpush.bf16.msrb.mxu1 %v2311_v22  ;;  %v2355_v22 = vld [vmem:[%s2536_s3 + $0x28] sm:$0xff] }
  0x81   :  { %1451 = vmatpush.bf16.msrb.mxu2 %v2319_v23  ;;  %v2354_v23 = vld [vmem:[%s2536_s3 + $0x20] sm:$0xff] }
  0x82   :  { %1464 = vmatpush.bf16.msrb.mxu3 %v2327_v24 }
  0x83   :  { %1426 = vmatpush.bf16.msrb.mxu0 %v2302_v25 }
  0x84   :  { %1439 = vmatpush.bf16.msrb.mxu1 %v2310_v27 }
  0x85   :  { %1452 = vmatpush.bf16.msrb.mxu2 %v2318_v30  ;;  %v2351_v30 = vld [vmem:[%s2536_s3 + $0x8] sm:$0xff] }
  0x86   :  { %1465 = vmatpush.bf16.msrb.mxu3 %v2326_v33  ;;  %1427 = vmatmul.bf16.vlgmr.msrb.gmra.mxu0 %v101_v34  ;;  %v2350_v34 = vld [vmem:[%s2536_s3] sm:$0xff] }
  0x87   :  { %1471 = vmatpush.bf16.msra.mxu0 %v2341_v28  ;;  %1440 = vmatmul.bf16.vlgmr.msrb.gmra.mxu1 %v102_v36  ;;  %v2352_v28 = vld [vmem:[%s2536_s3 + $0x10] sm:$0xff] }
  0x88   :  { %1484 = vmatpush.bf16.msra.mxu1 %v2349_v31  ;;  %1453 = vmatmul.bf16.vlgmr.msrb.gmra.mxu2 %v103_v37 }
  0x89   :  { %1466 = vmatmul.bf16.vlgmr.msrb.gmra.mxu3 %v104_v39  ;;  %1567 = vmatpush.bf16.msra.mxu2 %v2357_v16 }
  0x8b   :  { %1472 = vmatpush.bf16.msra.mxu0 %v2340_v38 }
  0x8c   :  { %1485 = vmatpush.bf16.msra.mxu1 %v2348_v40 }
  0x8d   :  { %1568 = vmatpush.bf16.msra.mxu2 %v2356_v19 }
  0x8f   :  { %1473 = vmatpush.bf16.msra.mxu0 %v2339_v41 }
  0x90   :  { %1486 = vmatpush.bf16.msra.mxu1 %v2347_v42 }
  0x91   :  { %1569 = vmatpush.bf16.msra.mxu2 %v2355_v22 }
  0x93   :  { %1474 = vmatpush.bf16.msra.mxu0 %v2338_v43 }
  0x94   :  { %1487 = vmatpush.bf16.msra.mxu1 %v2346_v44 }
  0x95   :  { %1570 = vmatpush.bf16.msra.mxu2 %v2354_v23 }
  0x97   :  { %1475 = vmatpush.bf16.msra.mxu0 %v2337_v45 }
  0x98   :  { %1488 = vmatpush.bf16.msra.mxu1 %v2345_v46 }
  0x99   :  { %1571 = vmatpush.bf16.msra.mxu2 %v2353_v26 }
  0x9b   :  { %1476 = vmatpush.bf16.msra.mxu0 %v2336_v47 }
  0x9c   :  { %1489 = vmatpush.bf16.msra.mxu1 %v2344_v48 }
  0x9d   :  { %1572 = vmatpush.bf16.msra.mxu2 %v2352_v28 }
  0x9f   :  { %1477 = vmatpush.bf16.msra.mxu0 %v2335_v49 }
  0xa0   :  { %1490 = vmatpush.bf16.msra.mxu1 %v2343_v50 }
  0xa1   :  { %1573 = vmatpush.bf16.msra.mxu2 %v2351_v30 }
  0xa3   :  { %1478 = vmatpush.bf16.msra.mxu0 %v2334_v51  ;;  %v1272_v58 = vpop.f32.mrf.mxu0 }
  0xa4   :  { %1491 = vmatpush.bf16.msra.mxu1 %v2342_v53  ;;  %v1273_v59 = vadd.f32 %v2362_v57, %v1272_v58  ;;  %v1285_v60 = vpop.f32.mrf.mxu1  ;;  %v2363_v58 = vld [vmem:[%s2537_s4] ss:$0 sm:$0xff] }
  0xa5   :  { %1574 = vmatpush.bf16.msra.mxu2 %v2350_v34 }
  0xa6   :  { %1479 = vmatmul.bf16.vlgmr.msra.gmra.mxu0 %v105_v55  ;;  %v1286_v61 = vadd.f32 %v1285_v60, %v1273_v59 }
  0xa7   :  { %1492 = vmatmul.bf16.vlgmr.msra.gmra.mxu1 %v106_v56 }
  0xab   :  { %v1298_v62 = vpop.f32.mrf.mxu2  ;;  %v1274_v0 = vpop.f32.mrf.mxu0 }
  0xac   :  { %v1299_v63 = vadd.f32 %v1298_v62, %v1286_v61  ;;  %v1311_v1 = vpop.f32.mrf.mxu3  ;;  %v1287_v2 = vpop.f32.mrf.mxu1 }
  0xae   :  { %v1312_v3 = vadd.f32 %v1311_v1, %v1299_v63 }
  0xb3   :  { %v1300_v4 = vpop.f32.mrf.mxu2 }
  0xb4   :  { %v1313_v5 = vpop.f32.mrf.mxu3 }
  0xc3   :  { %v1324_v6 = vpop.f32.mrf.mxu0 }
  0xc4   :  { %v1337_v7 = vpop.f32.mrf.mxu1  ;;  %v1325_v27 = vadd.f32 %v1324_v6, %v1312_v3 }
  0xc6   :  { %v1338_v29 = vadd.f32 %v1337_v7, %v1325_v27 }
  0xcb   :  { %v1350_v8 = vpop.f32.mrf.mxu2  ;;  %v1326_v10 = vpop.f32.mrf.mxu0 }
  0xcc   :  { %v1363_v9 = vpop.f32.mrf.mxu3  ;;  %v1339_v11 = vpop.f32.mrf.mxu1  ;;  %v1351_v31 = vadd.f32 %v1350_v8, %v1338_v29 }
  0xce   :  { %v1364_v35 = vadd.f32 %v1363_v9, %v1351_v31 }
  0xd3   :  { %v1352_v12 = vpop.f32.mrf.mxu2 }
  0xd4   :  { %v1365_v13 = vpop.f32.mrf.mxu3 }
  0xe3   :  { %v1376_v14 = vpop.f32.mrf.mxu0 }
  0xe4   :  { %v1389_v15 = vpop.f32.mrf.mxu1  ;;  %v1377_v36 = vadd.f32 %v1376_v14, %v1364_v35 }
  0xe6   :  { %v1390_v41 = vadd.f32 %v1389_v15, %v1377_v36 }
  0xeb   :  { %v1402_v17 = vpop.f32.mrf.mxu2  ;;  %v1378_v18 = vpop.f32.mrf.mxu0 }
  0xec   :  { %v1415_v20 = vpop.f32.mrf.mxu3  ;;  %v1391_v21 = vpop.f32.mrf.mxu1  ;;  %v1403_v42 = vadd.f32 %v1402_v17, %v1390_v41 }
  0xee   :  { %v1416_v43 = vadd.f32 %v1415_v20, %v1403_v42 }
  0xf3   :  { %v1404_v24 = vpop.f32.mrf.mxu2 }
  0xf4   :  { %v1417_v25 = vpop.f32.mrf.mxu3 }
 0x103   :  { %v1428_v32 = vpop.f32.mrf.mxu0 }
 0x104   :  { %v1441_v33 = vpop.f32.mrf.mxu1  ;;  %v1429_v46 = vadd.f32 %v1428_v32, %v1416_v43 }
 0x106   :  { %v1442_v47 = vadd.f32 %v1441_v33, %v1429_v46 }
 0x10b   :  { %v1454_v37 = vpop.f32.mrf.mxu2  ;;  %v1430_v38 = vpop.f32.mrf.mxu0 }
 0x10c   :  { %v1467_v39 = vpop.f32.mrf.mxu3  ;;  %v1443_v40 = vpop.f32.mrf.mxu1  ;;  %v1455_v48 = vadd.f32 %v1454_v37, %v1442_v47 }
 0x10e   :  { %v1468_v49 = vadd.f32 %v1467_v39, %v1455_v48 }
 0x113   :  { %v1456_v44 = vpop.f32.mrf.mxu2 }
 0x114   :  { %v1469_v45 = vpop.f32.mrf.mxu3 }
 0x123   :  { %v1480_v50 = vpop.f32.mrf.mxu0 }
 0x124   :  { %v1481_v51 = vadd.f32 %v1480_v50, %v1468_v49  ;;  %v1493_v52 = vpop.f32.mrf.mxu1 }
 0x126   :  { %v1494_v53 = vadd.f32 %v1493_v52, %v1481_v51 }
 0x128   :  { %v1497_v54 = vmax.f32 %v1494_v53, 0.0 }
 0x12a   :  { %v1498_v55 = vpack.c.bf16 %v1497_v54, %v1497_v54 }
 0x12b   :  { %v1482_v56 = vpop.f32.mrf.mxu0 }
 0x12c   :  { %v1495_v57 = vpop.f32.mrf.mxu1  ;;  %1575 = vmatmul.bf16.vlgmr.msra.gmra.mxu2 %v1498_v55 }
 0x1af   :  { %v1576_v59 = vpop.f32.mrf.mxu2 }
 0x1b0   :  { %v1577_v60 = vadd.f32 %v2363_v58, %v1576_v59 }
 0x1b2   :  { %1580 = vst [vmem:[#allocation5] sm:$0x3] %v1577_v60 }
 0x1b3   :  { %1591 = dma.vmem_to_hbm [thread:$0]  %s1587_s26, 32, %s1589_s29, [#allocation4]  }
 0x1b7   :  { %v1578_v61 = vpop.f32.mrf.mxu2 }
 0x1b8   :  { %2414 = dma.done.wait [#allocation4], 32  }
 0x1b9   :  { %2415 = vsyncadd [#allocation4], 4294967264 }
 0x1ba   :  { %1596 = vsyncpa [#allocation3], 1 }
 0x1bb   :  { %1597 = vsyncpa [#allocation4], 1 }

</bundles_post_ra>
